<compile_context>
chip_gen: v6e
topology: v6e:2x2x1
jax: 0.10.0
libtpu: 0.0.40
codegen_flags: <defaults>
</compile_context>

<pallas_src>
import jax
import jax.numpy as jnp
from jax.experimental import pallas as pl
from jax.experimental.pallas import tpu as pltpu

LANE = 128


def _round_up(n, m):
    return ((n + m - 1) // m) * m


def _cdiv(a, b):
    return -(-a // b)


def _choose_tb(B):
    """Pick the batch tile. <=256 rows: one grid step, minimal padding.
    Otherwise ~4 grid steps (>=2 tiles per v7x TensorCore), tb in [128, 1024]."""
    if B <= 256:
        return _round_up(B, 8)
    Bp = _round_up(B, 128)
    tb = _round_up(_cdiv(Bp, 4), 128)
    return max(128, min(1024, tb))


def _const_spec(shape):
    """Constant-index-map BlockSpec for a VMEM-resident operand (DMA'd once).
    Uses single buffering when the installed jax exposes pipeline_mode."""
    idx = lambda i: (0,) * len(shape)
    try:
        return pl.BlockSpec(shape, idx, pipeline_mode=pl.Buffered(1))
    except (AttributeError, TypeError):
        return pl.BlockSpec(shape, idx)


def dnn_kernel(x_ref, w1_ref, ws_ref, bs_ref, o_ref):
    """Fused 6-layer MLP: (Linear + ReLU[+Dropout-as-identity]) x 5 + Linear.

    x_ref : (tb, Fp)  f32   -- cast to bf16 in-kernel (no wrapper pre-pass)
    w1_ref: (Fp, 128) bf16  -- layer-1 weight, VMEM-resident
    ws_ref: (5, 128, 128) bf16 -- layers 2..6 weights (zero-padded), resident
    bs_ref: (8, 128)  f32   -- rows 0..5 are biases of layers 1..6, resident
    o_ref : (tb, 128) bf16  -- lane-dense logits (cols 10..127 are padding)
    """
    # f32 -> bf16 cast in-kernel (VPU slack is free; kernel is HBM-bound).
    h = x_ref[...].astype(jnp.bfloat16)

    # Layer 1
    y = jnp.dot(h, w1_ref[...], preferred_element_type=jnp.float32)
    y = jnp.maximum(y + bs_ref[0:1, :], 0.0)           # f32 bias add + ReLU
    h = y.astype(jnp.bfloat16)

    # Layers 2..6 (ReLU on all but the last). Static Python loop -> fully unrolled.
    n_stack = ws_ref.shape[0]
    for l in range(n_stack):
        y = jnp.dot(h, ws_ref[l], preferred_element_type=jnp.float32)
        y = y + bs_ref[l + 1:l + 2, :]
        if l < n_stack - 1:
            h = jnp.maximum(y, 0.0).astype(jnp.bfloat16)

    # bf16 logits writeback (halves the dominant HBM write stream).
    o_ref[...] = y.astype(jnp.bfloat16)


def _prepare_params(params, Fp):
    """Zero-pad all layer widths to 128 lanes (exact: ReLU(0)=0 propagates),
    cast weights to bf16 and stack the five 128x128 hidden weights."""
    w1, b1 = params[0]
    f1, o1 = w1.shape
    w1p = jnp.zeros((Fp, LANE), jnp.bfloat16).at[:f1, :o1].set(w1.astype(jnp.bfloat16))

    n_stack = len(params) - 1
    ws = jnp.zeros((n_stack, LANE, LANE), jnp.bfloat16)
    bs = jnp.zeros((8, LANE), jnp.float32)
    bs = bs.at[0, :o1].set(b1.astype(jnp.float32))
    for l, (w, b) in enumerate(params[1:]):
        fi, fo = w.shape
        ws = ws.at[l, :fi, :fo].set(w.astype(jnp.bfloat16))
        bs = bs.at[l + 1, :fo].set(b.astype(jnp.float32))
    return w1p, ws, bs


def dnn_forward(x, params, tb=None):
    """x: (B, num_features) f32.  params: list of (W (in, out), b (out,)) f32.

    Returns (B, 10) f32 logits.
    """
    B, F = x.shape
    Fp = _round_up(F, LANE)
    out_dim = params[-1][0].shape[1]

    if tb is None:
        tb = _choose_tb(B)
    tb = max(8, min(_round_up(tb, 8), _round_up(B, 8)))   # never over-pad small batches
    Bp = _round_up(B, tb)

    # Fast path: no wrapper pre-pass when shapes are already aligned.
    xp = x
    if Bp != B or Fp != F:
        xp = jnp.pad(x, ((0, Bp - B), (0, Fp - F)))

    w1p, ws, bs = _prepare_params(params, Fp)
    n_stack = ws.shape[0]

    flops = 2 * Bp * (Fp * LANE + n_stack * LANE * LANE)
    bytes_accessed = (Bp * Fp * 4            # x read (f32)
                      + Bp * LANE * 2        # logits write (bf16)
                      + (Fp * LANE + n_stack * LANE * LANE) * 2   # bf16 weights
                      + 8 * LANE * 4)        # biases

    grid = (Bp // tb,)
    out = pl.pallas_call(
        dnn_kernel,
        out_shape=jax.ShapeDtypeStruct((Bp, LANE), jnp.bfloat16),
        grid=grid,
        in_specs=[
            pl.BlockSpec((tb, Fp), lambda i: (i, 0)),          # streaming activations
            _const_spec((Fp, LANE)),                           # layer-1 weight
            _const_spec((n_stack, LANE, LANE)),                # stacked hidden weights
            _const_spec((8, LANE)),                            # stacked biases
        ],
        out_specs=pl.BlockSpec((tb, LANE), lambda i: (i, 0)),
        compiler_params=pltpu.CompilerParams(
            dimension_semantics=("parallel",)),                # shard batch tiles across TCs
        cost_estimate=pl.CostEstimate(
            flops=flops, transcendentals=0, bytes_accessed=bytes_accessed),
    )(xp, w1p, ws, bs)

    return out[:B, :out_dim].astype(jnp.float32)


def init_params(key, num_features):
    """Deterministic init mimicking PyTorch nn.Linear default (U(+-1/sqrt(fan_in))).
    Returns list of (W_transposed (in, out), b (out,)) in f32."""
    dims = [(num_features, 128), (128, 128), (128, 64), (64, 64), (64, 32), (32, 10)]
    params = []
    for (fan_in, fan_out) in dims:
        key, kw, kb = jax.random.split(key, 3)
        bound = 1.0 / jnp.sqrt(float(fan_in))
        w = jax.random.uniform(kw, (fan_in, fan_out), jnp.float32, -bound, bound)
        b = jax.random.uniform(kb, (fan_out,), jnp.float32, -bound, bound)
        params.append((w, b))
    return params


def reference_forward(x, params):
    """Pure-JAX reference with matching bf16-operand / f32-accumulate semantics."""
    h = x
    for i, (w, b) in enumerate(params):
        h = jnp.dot(h.astype(jnp.bfloat16), w.astype(jnp.bfloat16),
                    preferred_element_type=jnp.float32) + b
        if i < len(params) - 1:
            h = jnp.maximum(h, 0.0)
    return h


if __name__ == "__main__":
    key = jax.random.PRNGKey(0)
    num_features = 256   # small synthetic feature count (multiple of 128 lanes -> fast path)
    batch = 512          # auto tb=128 -> grid=(4,): 2 tiles per TensorCore on v7x

    k_x, k_p = jax.random.split(key)
    x = jax.random.normal(k_x, (batch, num_features), jnp.float32)
    params = init_params(k_p, num_features)

    out = dnn_forward(x, params)
    out = jax.block_until_ready(out)

    ref = reference_forward(x, params)
    assert out.shape == (batch, 10), out.shape
    max_err = float(jnp.max(jnp.abs(out - ref)))
    # Tolerance accounts for the bf16 logits writeback (~1e-2 relative worst case).
    assert jnp.allclose(out, ref, atol=2e-2, rtol=2e-2), \
        f"mismatch vs reference (max err {max_err})"

    print("KERNEL_OK")
</pallas_src>

<mosaic_0001>
module attributes {stable_mosaic.version = 11 : i64} {
  func.func @dnn_kernel(%arg0: i32, %arg1: memref<128x256xf32, #tpu.memory_space<vmem>>, %arg2: memref<256x128xbf16, #tpu.memory_space<vmem>>, %arg3: memref<5x128x128xbf16, #tpu.memory_space<vmem>>, %arg4: memref<8x128xf32, #tpu.memory_space<vmem>>, %arg5: memref<128x128xbf16, #tpu.memory_space<vmem>>) attributes {dimension_semantics = [#tpu.dimension_semantics<parallel>], iteration_bounds = array<i64: 4>, scalar_prefetch = 0 : i64, scratch_operands = 0 : i64, tpu.core_type = #tpu.core_type<tc>, window_params = [{transform_indices = @transform_0, window_bounds = array<i64: 128, 256>}, {pipeline_mode = #tpu.pipeline_mode<synchronous>, transform_indices = @transform_1, window_bounds = array<i64: 256, 128>}, {pipeline_mode = #tpu.pipeline_mode<synchronous>, transform_indices = @transform_2, window_bounds = array<i64: 5, 128, 128>}, {pipeline_mode = #tpu.pipeline_mode<synchronous>, transform_indices = @transform_3, window_bounds = array<i64: 8, 128>}, {transform_indices = @transform_4, window_bounds = array<i64: 128, 128>}]} {
    %c0 = arith.constant 0 : index
    %c0_0 = arith.constant 0 : index
    %0 = vector.load %arg1[%c0, %c0_0] : memref<128x256xf32, #tpu.memory_space<vmem>>, vector<128x256xf32>
    %1 = arith.truncf %0 : vector<128x256xf32> to vector<128x256xbf16>
    %c0_1 = arith.constant 0 : index
    %c0_2 = arith.constant 0 : index
    %2 = vector.load %arg2[%c0_1, %c0_2] : memref<256x128xbf16, #tpu.memory_space<vmem>>, vector<256x128xbf16>
    %cst = arith.constant dense<0.000000e+00> : vector<128x128xf32>
    %3 = tpu.matmul %1, %2, %cst {dimension_numbers = #tpu.dot_dimension_numbers<[1], [0], [0], [1], [0, 0, 1, 1], [], []>} : vector<128x256xbf16>, vector<256x128xbf16>, vector<128x128xf32> -> vector<128x128xf32>
    %c0_3 = arith.constant 0 : index
    %c0_4 = arith.constant 0 : index
    %4 = vector.load %arg4[%c0_3, %c0_4] : memref<8x128xf32, #tpu.memory_space<vmem>>, vector<1x128xf32>
    %5 = vector.broadcast %4 : vector<1x128xf32> to vector<128x128xf32>
    %6 = arith.addf %3, %5 : vector<128x128xf32>
    %cst_5 = arith.constant 0.000000e+00 : f32
    %7 = vector.broadcast %cst_5 : f32 to vector<128x128xf32>
    %8 = arith.maximumf %6, %7 : vector<128x128xf32>
    %9 = arith.truncf %8 : vector<128x128xf32> to vector<128x128xbf16>
    %c0_6 = arith.constant 0 : index
    %c0_7 = arith.constant 0 : index
    %c0_8 = arith.constant 0 : index
    %10 = vector.load %arg3[%c0_6, %c0_7, %c0_8] : memref<5x128x128xbf16, #tpu.memory_space<vmem>>, vector<1x128x128xbf16>
    %11 = vector.shape_cast %10 : vector<1x128x128xbf16> to vector<128x128xbf16>
    %cst_9 = arith.constant dense<0.000000e+00> : vector<128x128xf32>
    %12 = tpu.matmul %9, %11, %cst_9 {dimension_numbers = #tpu.dot_dimension_numbers<[1], [0], [0], [1], [0, 0, 1, 1], [], []>} : vector<128x128xbf16>, vector<128x128xbf16>, vector<128x128xf32> -> vector<128x128xf32>
    %c1 = arith.constant 1 : index
    %c0_10 = arith.constant 0 : index
    %13 = vector.load %arg4[%c1, %c0_10] : memref<8x128xf32, #tpu.memory_space<vmem>>, vector<1x128xf32>
    %14 = vector.broadcast %13 : vector<1x128xf32> to vector<128x128xf32>
    %15 = arith.addf %12, %14 : vector<128x128xf32>
    %cst_11 = arith.constant 0.000000e+00 : f32
    %16 = vector.broadcast %cst_11 : f32 to vector<128x128xf32>
    %17 = arith.maximumf %15, %16 : vector<128x128xf32>
    %18 = arith.truncf %17 : vector<128x128xf32> to vector<128x128xbf16>
    %c1_12 = arith.constant 1 : index
    %c0_13 = arith.constant 0 : index
    %c0_14 = arith.constant 0 : index
    %19 = vector.load %arg3[%c1_12, %c0_13, %c0_14] : memref<5x128x128xbf16, #tpu.memory_space<vmem>>, vector<1x128x128xbf16>
    %20 = vector.shape_cast %19 : vector<1x128x128xbf16> to vector<128x128xbf16>
    %cst_15 = arith.constant dense<0.000000e+00> : vector<128x128xf32>
    %21 = tpu.matmul %18, %20, %cst_15 {dimension_numbers = #tpu.dot_dimension_numbers<[1], [0], [0], [1], [0, 0, 1, 1], [], []>} : vector<128x128xbf16>, vector<128x128xbf16>, vector<128x128xf32> -> vector<128x128xf32>
    %c2 = arith.constant 2 : index
    %c0_16 = arith.constant 0 : index
    %22 = vector.load %arg4[%c2, %c0_16] : memref<8x128xf32, #tpu.memory_space<vmem>>, vector<1x128xf32>
    %23 = vector.broadcast %22 : vector<1x128xf32> to vector<128x128xf32>
    %24 = arith.addf %21, %23 : vector<128x128xf32>
    %cst_17 = arith.constant 0.000000e+00 : f32
    %25 = vector.broadcast %cst_17 : f32 to vector<128x128xf32>
    %26 = arith.maximumf %24, %25 : vector<128x128xf32>
    %27 = arith.truncf %26 : vector<128x128xf32> to vector<128x128xbf16>
    %c2_18 = arith.constant 2 : index
    %c0_19 = arith.constant 0 : index
    %c0_20 = arith.constant 0 : index
    %28 = vector.load %arg3[%c2_18, %c0_19, %c0_20] : memref<5x128x128xbf16, #tpu.memory_space<vmem>>, vector<1x128x128xbf16>
    %29 = vector.shape_cast %28 : vector<1x128x128xbf16> to vector<128x128xbf16>
    %cst_21 = arith.constant dense<0.000000e+00> : vector<128x128xf32>
    %30 = tpu.matmul %27, %29, %cst_21 {dimension_numbers = #tpu.dot_dimension_numbers<[1], [0], [0], [1], [0, 0, 1, 1], [], []>} : vector<128x128xbf16>, vector<128x128xbf16>, vector<128x128xf32> -> vector<128x128xf32>
    %c3 = arith.constant 3 : index
    %c0_22 = arith.constant 0 : index
    %31 = vector.load %arg4[%c3, %c0_22] : memref<8x128xf32, #tpu.memory_space<vmem>>, vector<1x128xf32>
    %32 = vector.broadcast %31 : vector<1x128xf32> to vector<128x128xf32>
    %33 = arith.addf %30, %32 : vector<128x128xf32>
    %cst_23 = arith.constant 0.000000e+00 : f32
    %34 = vector.broadcast %cst_23 : f32 to vector<128x128xf32>
    %35 = arith.maximumf %33, %34 : vector<128x128xf32>
    %36 = arith.truncf %35 : vector<128x128xf32> to vector<128x128xbf16>
    %c3_24 = arith.constant 3 : index
    %c0_25 = arith.constant 0 : index
    %c0_26 = arith.constant 0 : index
    %37 = vector.load %arg3[%c3_24, %c0_25, %c0_26] : memref<5x128x128xbf16, #tpu.memory_space<vmem>>, vector<1x128x128xbf16>
    %38 = vector.shape_cast %37 : vector<1x128x128xbf16> to vector<128x128xbf16>
    %cst_27 = arith.constant dense<0.000000e+00> : vector<128x128xf32>
    %39 = tpu.matmul %36, %38, %cst_27 {dimension_numbers = #tpu.dot_dimension_numbers<[1], [0], [0], [1], [0, 0, 1, 1], [], []>} : vector<128x128xbf16>, vector<128x128xbf16>, vector<128x128xf32> -> vector<128x128xf32>
    %c4 = arith.constant 4 : index
    %c0_28 = arith.constant 0 : index
    %40 = vector.load %arg4[%c4, %c0_28] : memref<8x128xf32, #tpu.memory_space<vmem>>, vector<1x128xf32>
    %41 = vector.broadcast %40 : vector<1x128xf32> to vector<128x128xf32>
    %42 = arith.addf %39, %41 : vector<128x128xf32>
    %cst_29 = arith.constant 0.000000e+00 : f32
    %43 = vector.broadcast %cst_29 : f32 to vector<128x128xf32>
    %44 = arith.maximumf %42, %43 : vector<128x128xf32>
    %45 = arith.truncf %44 : vector<128x128xf32> to vector<128x128xbf16>
    %c4_30 = arith.constant 4 : index
    %c0_31 = arith.constant 0 : index
    %c0_32 = arith.constant 0 : index
    %46 = vector.load %arg3[%c4_30, %c0_31, %c0_32] : memref<5x128x128xbf16, #tpu.memory_space<vmem>>, vector<1x128x128xbf16>
    %47 = vector.shape_cast %46 : vector<1x128x128xbf16> to vector<128x128xbf16>
    %cst_33 = arith.constant dense<0.000000e+00> : vector<128x128xf32>
    %48 = tpu.matmul %45, %47, %cst_33 {dimension_numbers = #tpu.dot_dimension_numbers<[1], [0], [0], [1], [0, 0, 1, 1], [], []>} : vector<128x128xbf16>, vector<128x128xbf16>, vector<128x128xf32> -> vector<128x128xf32>
    %c5 = arith.constant 5 : index
    %c0_34 = arith.constant 0 : index
    %49 = vector.load %arg4[%c5, %c0_34] : memref<8x128xf32, #tpu.memory_space<vmem>>, vector<1x128xf32>
    %50 = vector.broadcast %49 : vector<1x128xf32> to vector<128x128xf32>
    %51 = arith.addf %48, %50 : vector<128x128xf32>
    %52 = arith.truncf %51 : vector<128x128xf32> to vector<128x128xbf16>
    %c0_35 = arith.constant 0 : index
    %c0_36 = arith.constant 0 : index
    %53 = vector.load %arg5[%c0_35, %c0_36] : memref<128x128xbf16, #tpu.memory_space<vmem>>, vector<128x128xbf16>
    tpu.vector_store %arg5[%c0_35, %c0_36], %52 {strides = array<i32>} : memref<128x128xbf16, #tpu.memory_space<vmem>>, vector<128x128xbf16>,
    return
  }
  func.func @transform_0(%arg0: i32) -> (i32, i32) {
    %c0_i32 = arith.constant 0 : i32
    %c0_i32_0 = arith.constant 0 : i32
    return %arg0, %c0_i32 : i32, i32
  }
  func.func @transform_1(%arg0: i32) -> (i32, i32) {
    %c0_i32 = arith.constant 0 : i32
    %c0_i32_0 = arith.constant 0 : i32
    %c0_i32_1 = arith.constant 0 : i32
    return %c0_i32, %c0_i32_0 : i32, i32
  }
  func.func @transform_2(%arg0: i32) -> (i32, i32, i32) {
    %c0_i32 = arith.constant 0 : i32
    %c0_i32_0 = arith.constant 0 : i32
    %c0_i32_1 = arith.constant 0 : i32
    %c0_i32_2 = arith.constant 0 : i32
    return %c0_i32, %c0_i32_0, %c0_i32_1 : i32, i32, i32
  }
  func.func @transform_3(%arg0: i32) -> (i32, i32) {
    %c0_i32 = arith.constant 0 : i32
    %c0_i32_0 = arith.constant 0 : i32
    %c0_i32_1 = arith.constant 0 : i32
    return %c0_i32, %c0_i32_0 : i32, i32
  }
  func.func @transform_4(%arg0: i32) -> (i32, i32) {
    %c0_i32 = arith.constant 0 : i32
    %c0_i32_0 = arith.constant 0 : i32
    return %arg0, %c0_i32 : i32, i32
  }
}

</mosaic_0001>

<bundles_post_ra>
// kernel: tpu_custom_call.1
= control target key start
LH: loop header
LB: loop body
LE: loop exit
PB: predicated region body
PF: predicated region fallthrough
CT: control target
= control target key end

     0   :  { %9 = vsyncpa [#allocation3], 0  ;;  %s2810_s0 = inlined_call_operand.hbm [shape: f32[512,256], index: 0, kind: input, shape index: {}]   ;;  %s2811_s1 = inlined_call_operand.hbm [shape: bf16[256,128], index: 1, kind: input, shape index: {}]   ;;  %s2812_s2 = inlined_call_operand.hbm [shape: bf16[5,128,128], index: 2, kind: input, shape index: {}]   ;;  %s2813_s3 = inlined_call_operand.hbm [shape: f32[8,128], index: 3, kind: input, shape index: {}]   ;;  %s2814_s4 = inlined_call_operand.hbm [shape: bf16[512,128], index: 4, kind: output, shape index: {}]  }
   0x1   :  { %11 = vsyncpa [#allocation3 + $0x1], 0 }
   0x2   :  { %12 = vsyncpa [#allocation6], 0 }
   0x3   :  { %13 = vsyncpa [#allocation9], 0 }
   0x4   :  { %14 = vsyncpa [#allocation4], 0 }
   0x5   :  { %16 = vsyncpa [#allocation4 + $0x1], 0  ;;  %s2530_s15 = smov 0   ;;  %s2532_s16 = smov 0  }
   0x6   :  { %s2534_s17 = smov 0   ;;  %s2536_s18 = smov 0  }
   0x7 LB: > { %s2551_s19 = sadd.s32 4294967295, %s2492_s18   ;;  %s1690_s20 = sadd.s32 4294967294, %s2492_s18   ;;  %s2492_s18 = sphi %s2536_s18, %s2837_s18   ;;  %s2488_s17 = sphi %s2534_s17, %s2836_s17   ;;  %s2484_s16 = sphi %s2532_s16, %s2835_s16   ;;  %s2480_s15 = sphi %s2530_s15, %s2834_s15  }
   0x8   : > { %p42_p0 = scmp.ne.s32.totalorder %s2484_s16, %s2480_s15  ;;  %p2815_p1 = scmp.eq.s32.totalorder %s2551_s19, 0 }
   0x9   : > { %p135_p3 = scmp.eq.s32.totalorder %s1690_s20, 3  ;;  %p1691_p5 = scmp.ge.s32.totalorder %s2492_s18, 1 }
   0xa   : > { %p2560_p4 = por %p2815_p1, %p42_p0  ;;  %p142_p7 = scmp.lt.s32.totalorder %s2492_s18, 5 }
   0xb   : > { %p2565_p6 = por %p135_p3, %p42_p0  ;;  %s2494_s24 = smov [#allocation5]  }
   0xc   : > { %s2819_s21 = scalar_select %p2560_p4, 1, 0 }
   0xd   : > { %s2820_s22 = scalar_select %p2565_p6, 1, 0 }
   0xe   : > { %p2570_p8 = pnand %p1691_p5, %p142_p7  ;;  %s154_s25 = sshll.u32 %s2494_s24, 4  ;;  %s155_s25 = int_to_ptr.vmem [resolvable:$true] %s154_s25 }
   0xf   : > { %s2495_s27 = smov [#allocation7]   ;;  %s2496_s29 = smov [#allocation8]  }
  0x10   : > { %s2821_s23 = scalar_select %p2570_p8, 1, 0 }
  0x11   : > { %p2191_p9 = pneg %p2570_p8  ;;  %s167_s28 = sshll.u32 %s2495_s27, 4  ;;  %s168_s28 = int_to_ptr.vmem [resolvable:$true] %s167_s28 }
  0x12   : > { %s181_s30 = sshll.u32 %s2496_s29, 4  ;;  %s2325_s5 = scalar_lea.vmem %s155_s25, 2048  ;;  %s182_s30 = int_to_ptr.vmem [resolvable:$true] %s181_s30 }
  0x13   : > { %p2578_p10 = pnand %p2191_p9, %p2815_p1  ;;  %p2326_p12 = scmp.ne.s32.totalorder %s155_s25, %s2325_s5 }
  0x14   : > { %p2333_p3 = scmp.lt.s32.totalorder %s155_s25, %s155_s25  ;;  %p2334_p5 = scmp.lt.s32.totalorder %s2325_s5, %s2325_s5 }
  0x15   : > { %p2316_p11 = pneg %p2578_p10 }
  0x16   : > { %p2335_p7 = por %p2334_p5, %p2333_p3 }
  0x17   : > { %p2328_p13 = pnand %p2326_p12, %p2316_p11 }
  0x19   : > { %p2329_p0 = pneg %p2328_p13 }
  0x1b   : > { %p2336_p9 = pnand %p2335_p7, %p2329_p0 }
  0x1d   : > { %2339 = shalt.err (!%p2336_p9)
}
  0x1e   : > { %s2497_s6 = smov 64   ;;  %s2498_s7 = smov 4  }
  0x1f   : > { %2194 = dma.hbm_to_vmem [thread:$0]  (!%p2578_p10), %s2811_s1, 2048, %s155_s25, [#allocation6], %s2497_s6, %s2497_s6, %s2498_s7  }
  0x20   : > { %s2351_s10 = scalar_lea.vmem %s168_s28, 5120  ;;  %p2359_p2 = scmp.lt.s32.totalorder %s168_s28, %s168_s28 }
  0x21   : > { %p2352_p1 = scmp.ne.s32.totalorder %s168_s28, %s2351_s10  ;;  %p2360_p6 = scmp.lt.s32.totalorder %s2351_s10, %s2351_s10 }
  0x23   : > { %p2354_p12 = pnand %p2352_p1, %p2316_p11  ;;  %p2361_p3 = por %p2360_p6, %p2359_p2 }
  0x25   : > { %p2355_p13 = pneg %p2354_p12 }
  0x27   : > { %p2362_p0 = pnand %p2361_p3, %p2355_p13 }
  0x29   : > { %2365 = shalt.err (!%p2362_p0)
}
  0x2a   : > { %2197 = dma.hbm_to_vmem [thread:$0]  (!%p2578_p10), %s2812_s2, 5120, %s168_s28, [#allocation6], %s2497_s6, %s2497_s6, %s2498_s7  }
  0x2b   : > { %s2377_s13 = scalar_lea.vmem %s182_s30, 128  ;;  %p2385_p9 = scmp.lt.s32.totalorder %s182_s30, %s182_s30 }
  0x2c   : > { %p2378_p5 = scmp.ne.s32.totalorder %s182_s30, %s2377_s13  ;;  %p2386_p12 = scmp.lt.s32.totalorder %s2377_s13, %s2377_s13 }
  0x2e   : > { %p2380_p7 = pnand %p2378_p5, %p2316_p11  ;;  %p2387_p4 = por %p2386_p12, %p2385_p9 }
  0x30   : > { %p2381_p1 = pneg %p2380_p7 }
  0x32   : > { %p2388_p2 = pnand %p2387_p4, %p2381_p1 }
  0x34   : > { %2391 = shalt.err (!%p2388_p2)
}
  0x35   : > { %2200 = dma.hbm_to_vmem [thread:$0]  (!%p2578_p10), %s2813_s3, 128, %s182_s30, [#allocation9]  }
  0x36   : > { %s2609_s24 = sadd.s32 1, %s2492_s18   ;;  %s29_s26 = sadd.s32 1, %s2488_s17 }
  0x37   : > { %s26_s25 = ssub.s32 %s2492_s18, %s2609_s24  ;;  %p36_p6 = scmp.ne.s32.totalorder %s2488_s17, %s2484_s16 }
  0x38   : > { %p27_p4 = scmp.eq.s32.totalorder %s26_s25, 0  ;;  %p37_p11 = scmp.eq.s32.totalorder %s2492_s18, 0 }
  0x39   : > { %p2212_p13 = scmp.lt.s32.totalorder %s2492_s18, 4  ;;  %p2823_p0 = scmp.eq.s32.totalorder %s2551_s19, 3 }
  0x3a   : > { %s2619_s27 = scalar_select %p27_p4, %s2488_s17, %s29_s26  }
  0x3b   : > { %p38_p3 = por %p37_p11, %p36_p6  ;;  %p2623_p5 = por %p2823_p0, %p36_p6 }
  0x3c   : > { %s192_s29 = sand.u32 1, %s2488_s17   ;;  %s1790_s5 = sshll.u32 %s2492_s18, 12 }
  0x3d   : > { %s2824_s28 = scalar_select %p2623_p5, 1, 0 }
  0x3e   : > { %s1696_s30 = sshll.u32 %s192_s29, 8  ;;  %s2632_s8 = scalar_lea.hbm %s2810_s0, %s1790_s5 }
  0x3f   : > { %s196_s9 = scalar_lea.vmem [#allocation2], %s1696_s30  ;;  %p2634_p10 = pnand %p2212_p13, %p38_p3 }
  0x40   : > { %s204_s10 = sshll.u32 %s196_s9, 4  ;;  %s2640_s12 = scalar_lea.sflag [#allocation3], %s192_s29  ;;  %s2638_s10 = int_to_ptr.vmem [resolvable:$true] %s204_s10 }
  0x41   : > { %s2392_s13 = scalar_lea.hbm %s2632_s8, 4096  ;;  %p2394_p1 = pneg %p2634_p10 }
  0x42   : > { %p2393_p7 = scmp.ne.s32.totalorder %s2632_s8, %s2392_s13  ;;  %s2397_s25 = scalar_lea.hbm %s2810_s0, 16384 }
  0x43   : > { %p2398_p2 = scmp.lt.s32.totalorder %s2632_s8, %s2810_s0  ;;  %p2399_p4 = scmp.lt.s32.totalorder %s2397_s25, %s2392_s13 }
  0x44   : > { %p2395_p9 = pnand %p2394_p1, %p2393_p7 }
  0x45   : > { %p2400_p6 = por %p2399_p4, %p2398_p2 }
  0x46   : > { %p2396_p12 = pneg %p2395_p9 }
  0x48   : > { %p2401_p11 = pnand %p2400_p6, %p2396_p12 }
  0x4a   : > { %2404 = shalt.err (!%p2401_p11)
}
  0x4b   : > { %s2405_s29 = scalar_lea.vmem %s2638_s10, 4096  ;;  %s2499_s30 = smov [#allocation2]  }
  0x4c   : > { %p2406_p13 = scmp.ne.s32.totalorder %s2638_s10, %s2405_s29  ;;  %s2410_s6 = sshll.u32 %s2499_s30, 4  ;;  %s2411_s6 = int_to_ptr.vmem [resolvable:$false] %s2410_s6 }
  0x4d   : > { %s2412_s7 = scalar_lea.vmem %s2411_s6, 8192  ;;  %p2413_p7 = scmp.lt.s32.totalorder %s2638_s10, %s2411_s6 }
  0x4e   : > { %p2408_p3 = pnand %p2406_p13, %p2394_p1  ;;  %p2414_p9 = scmp.lt.s32.totalorder %s2412_s7, %s2405_s29 }
  0x50   : > { %p2409_p0 = pneg %p2408_p3  ;;  %p2415_p5 = por %p2414_p9, %p2413_p7 }
  0x52   : > { %p2416_p8 = pnand %p2415_p5, %p2409_p0 }
  0x54   : > { %2419 = shalt.err (!%p2416_p8)
}
  0x55   : > { %s2500_s9 = smov 256   ;;  %s2501_s13 = smov 16  }
  0x56   : > { %2204 = dma.hbm_to_vmem [thread:$0]  (!%p2634_p10), %s2632_s8, 4096, %s2638_s10, %s2640_s12, %s2500_s9, %s2500_s9, %s2501_s13  }
  0x57   : > { %p2826_p1 = scmp.ne.s32.totalorder %s2821_s23, 0 }
  0x58   : > { %s2664_s14 = sand.u32 (!%p2826_p1), 1, %s2484_s16   ;;  %p2827_p8 = scmp.ne.s32.totalorder (!%p2826_p1), %s2819_s21, 0 }
  0x59   : > { %216 = sbr.rel (%p2826_p1) target bundleno = 1438 (0x59e), region = 36  ;;  %s1701_s20 = sshll.u32 (!%p2826_p1), %s2664_s14, 8 }
  0x5a   : > { %s219_s25 = scalar_lea.sflag (!%p2826_p1), [#allocation3], %s2664_s14  ;;  %s2668_s26 = scalar_lea.vmem (!%p2826_p1), [#allocation2], %s1701_s20 }
  0x5e   : > { %2463 = dma.done.wait (%p2827_p8), %s219_s25, 4096  }
  0x5f   : > { %2465 = vsyncadd (%p2827_p8), %s219_s25, 4294963200  ;;  %p2828_p5 = scmp.eq.s32.totalorder %s2551_s19, 0 }
  0x61   : > { %2467 = dma.done.wait (%p2828_p5), [#allocation6], 7168   ;;  %p2829_p10 = pmov %p2828_p5 }
  0x62   : > { %p2830_p12 = pmov %p2828_p5 }
  0x63   : > { %2469 = vsyncadd (%p2829_p10), [#allocation6], 4294960128 }
  0x64   : > { %2471 = dma.done.wait (%p2830_p12), [#allocation9], 128   ;;  %p2831_p2 = pmov %p2828_p5 }
  0x65   : > { %v2258_v0 = vld [vmem:[#allocation5 + $0x78] sm:$0xff]   ;;  %v2260_v2 = vld [vmem:[#allocation5 + $0x70] sm:$0xff]   ;;  %v2262_v4 = vld [vmem:[#allocation5 + $0x68] sm:$0xff]   ;;  %s1705_s21 = sshll.u32 %s2664_s14, 6  ;;  %s1807_s10 = sshll.u32 %s2551_s19, 10 }
  0x66   : > { %2473 = vsyncadd (%p2831_p2), [#allocation9], 4294967168  ;;  %v2259_v1 = vld [vmem:[#allocation5 + $0x38] sm:$0xff]   ;;  %1855 = vmatprep.subr.bf16.mxu0 %v2258_v0  ;;  %v2261_v3 = vld [vmem:[#allocation5 + $0x30] sm:$0xff]   ;;  %s2751_s23 = scalar_lea.vmem [#allocation10], %s1705_s21  ;;  %s2766_s5 = scalar_lea.hbm %s2814_s4, %s1807_s10 }
  0x67   : > { %1856 = vmatpush3.bf16.msra.mxu0 %v2259_v1  ;;  %v2263_v5 = vld [vmem:[#allocation5 + $0x28] sm:$0xff]   ;;  %v2264_v6 = vld [vmem:[#allocation5 + $0x60] sm:$0xff]   ;;  %v2266_v8 = vld [vmem:[#allocation5 + $0x58] sm:$0xff]   ;;  %s1588_s8 = sshll.u32 %s2751_s23, 4  ;;  %s1575_s29 = scalar_lea.sflag [#allocation4], %s2664_s14  ;;  %s2761_s8 = int_to_ptr.vmem [resolvable:$true] %s1588_s8 }
  0x68   : > { %1857 = vmatprep.subr.bf16.mxu0 %v2260_v2  ;;  %v2265_v7 = vld [vmem:[#allocation5 + $0x20] sm:$0xff]   ;;  %v2267_v9 = vld [vmem:[#allocation5 + $0x18] sm:$0xff]   ;;  %v2268_v10 = vld [vmem:[#allocation5 + $0x50] sm:$0xff]   ;;  %s2420_s30 = scalar_lea.vmem %s2761_s8, 1024  ;;  %p2832_p6 = scmp.ne.s32.totalorder %s2824_s28, 0 }
  0x69   : > { %v263_v11 = vld [vmem:[%s2668_s26 + $0x8] sm:$0xff]  ;;  %v265_v12 = vld [vmem:[%s2668_s26 + $0x18] sm:$0xff]  ;;  %v2269_v14 = vld [vmem:[#allocation5 + $0x10] sm:$0xff]   ;;  %p2421_p4 = scmp.ne.s32.totalorder %s2761_s8, %s2420_s30  ;;  %s2502_s19 = smov [#allocation10]  }
  0x6a   : > { %v295_v13 = vpack.c.bf16 %v265_v12, %v263_v11  ;;  %v2270_v15 = vld [vmem:[#allocation5 + $0x48] sm:$0xff]   ;;  %v2272_v17 = vld [vmem:[#allocation5 + $0x40] sm:$0xff]   ;;  %v264_v20 = vld [vmem:[%s2668_s26 + $0x10] sm:$0xff]  ;;  %s2424_s6 = sshll.u32 %s2502_s19, 4  ;;  %s2425_s6 = int_to_ptr.vmem [resolvable:$false] %s2424_s6 }
  0x6b   : > { %1858 = vmatpush3.bf16.msra.mxu0 %v2261_v3  ;;  %v2271_v16 = vld [vmem:[#allocation5 + $0x8] sm:$0xff]   ;;  %v2273_v18 = vld [vmem:[#allocation5] sm:$0xff]   ;;  %v269_v22 = vld [vmem:[%s2668_s26 + $0x38] sm:$0xff]  ;;  %p2422_p11 = pnand %p2421_p4, %p2832_p6  ;;  %s2426_s7 = scalar_lea.vmem %s2425_s6, 2048 }
  0x6c   : > { %1859 = vmatprep.subr.bf16.mxu0 %v2262_v4  ;;  %475 = vmatprep.mubr.bf16.mxu0 %v295_v13  ;;  %v262_v19 = vld [vmem:[%s2668_s26] sm:$0xff]  ;;  %v267_v21 = vld [vmem:[%s2668_s26 + $0x28] sm:$0xff]  ;;  %v2274_v23 = vld [vmem:[#allocation7 + $0x38] sm:$0xff]   ;;  %p2427_p3 = scmp.lt.s32.totalorder %s2761_s8, %s2425_s6  ;;  %p2428_p0 = scmp.lt.s32.totalorder %s2426_s7, %s2420_s30 }
  0x6d   : > { %v2275_v24 = vld [vmem:[#allocation7 + $0x30] sm:$0xff]   ;;  %1999 = vmatprep.subr.bf16.mxu1 %v2274_v23  ;;  %v2276_v25 = vld [vmem:[#allocation7 + $0x28] sm:$0xff]   ;;  %v294_v26 = vpack.c.bf16 %v264_v20, %v262_v19  ;;  %v297_v27 = vpack.c.bf16 %v269_v22, %v267_v21  ;;  %v266_v28 = vld [vmem:[%s2668_s26 + $0x20] sm:$0xff]  ;;  %p2423_p13 = pneg %p2422_p11 }
  0x6e   : > { %2000 = vmatpush3.bf16.msra.mxu1 %v2274_v23  ;;  %v268_v29 = vld [vmem:[%s2668_s26 + $0x30] sm:$0xff]  ;;  %v271_v30 = vld [vmem:[%s2668_s26 + $0x48] sm:$0xff]  ;;  %v273_v31 = vld [vmem:[%s2668_s26 + $0x58] sm:$0xff]  ;;  %p2429_p7 = por %p2428_p0, %p2427_p3 }
  0x6f   : > { %1860 = vmatpush3.bf16.msra.mxu0 %v2263_v5  ;;  %2001 = vmatprep.subr.bf16.mxu1 %v2275_v24  ;;  %v296_v32 = vpack.c.bf16 %v268_v29, %v266_v28  ;;  %v299_v33 = vpack.c.bf16 %v273_v31, %v271_v30  ;;  %v270_v34 = vld [vmem:[%s2668_s26 + $0x40] sm:$0xff]  ;;  %v272_v35 = vld [vmem:[%s2668_s26 + $0x50] sm:$0xff]  ;;  %v275_v36 = vld [vmem:[%s2668_s26 + $0x68] sm:$0xff] }
  0x70   : > { %1861 = vmatprep.subr.bf16.mxu0 %v2264_v6  ;;  %v277_v37 = vld [vmem:[%s2668_s26 + $0x78] sm:$0xff]  ;;  %v298_v38 = vpack.c.bf16 %v272_v35, %v270_v34  ;;  %v274_v40 = vld [vmem:[%s2668_s26 + $0x60] sm:$0xff]  ;;  %v276_v41 = vld [vmem:[%s2668_s26 + $0x70] sm:$0xff]  ;;  %p2430_p9 = pnand %p2429_p7, %p2423_p13 }
  0x71   : > { %v301_v39 = vpack.c.bf16 %v277_v37, %v275_v36  ;;  %v279_v42 = vld [vmem:[%s2668_s26 + $0x88] sm:$0xff]  ;;  %v281_v43 = vld [vmem:[%s2668_s26 + $0x98] sm:$0xff]  ;;  %v300_v44 = vpack.c.bf16 %v276_v41, %v274_v40  ;;  %v278_v46 = vld [vmem:[%s2668_s26 + $0x80] sm:$0xff] }
  0x72   : > { %2002 = vmatpush3.bf16.msra.mxu1 %v2275_v24  ;;  %v303_v45 = vpack.c.bf16 %v281_v43, %v279_v42  ;;  %v280_v47 = vld [vmem:[%s2668_s26 + $0x90] sm:$0xff]  ;;  %v283_v48 = vld [vmem:[%s2668_s26 + $0xa8] sm:$0xff]  ;;  %v285_v49 = vld [vmem:[%s2668_s26 + $0xb8] sm:$0xff] }
  0x73   : > { %1862 = vmatpush3.bf16.msra.mxu0 %v2265_v7  ;;  %2003 = vmatprep.subr.bf16.mxu1 %v2276_v25  ;;  %v302_v50 = vpack.c.bf16 %v280_v47, %v278_v46  ;;  %v305_v51 = vpack.c.bf16 %v285_v49, %v283_v48  ;;  %v282_v52 = vld [vmem:[%s2668_s26 + $0xa0] sm:$0xff]  ;;  %v284_v53 = vld [vmem:[%s2668_s26 + $0xb0] sm:$0xff]  ;;  %v287_v54 = vld [vmem:[%s2668_s26 + $0xc8] sm:$0xff] }
  0x74   : > { %1863 = vmatprep.subr.bf16.mxu0 %v2266_v8  ;;  %v289_v55 = vld [vmem:[%s2668_s26 + $0xd8] sm:$0xff]  ;;  %v304_v56 = vpack.c.bf16 %v284_v53, %v282_v52  ;;  %v286_v58 = vld [vmem:[%s2668_s26 + $0xc0] sm:$0xff]  ;;  %v288_v59 = vld [vmem:[%s2668_s26 + $0xd0] sm:$0xff] }
  0x75   : > { %v307_v57 = vpack.c.bf16 %v289_v55, %v287_v54  ;;  %v291_v60 = vld [vmem:[%s2668_s26 + $0xe8] sm:$0xff]  ;;  %v293_v61 = vld [vmem:[%s2668_s26 + $0xf8] sm:$0xff]  ;;  %v306_v62 = vpack.c.bf16 %v288_v59, %v286_v58  ;;  %v290_v0 = vld [vmem:[%s2668_s26 + $0xe0] sm:$0xff] }
  0x76   : > { %2004 = vmatpush3.bf16.msra.mxu1 %v2276_v25  ;;  %v309_v63 = vpack.c.bf16 %v293_v61, %v291_v60  ;;  %v292_v1 = vld [vmem:[%s2668_s26 + $0xf0] sm:$0xff]  ;;  %v2277_v3 = vld [vmem:[#allocation7 + $0x20] sm:$0xff]   ;;  %v2278_v4 = vld [vmem:[#allocation7 + $0x18] sm:$0xff]  }
  0x77   : > { %1864 = vmatpush3.bf16.msra.mxu0 %v2267_v9  ;;  %v308_v2 = vpack.c.bf16 %v292_v1, %v290_v0  ;;  %2005 = vmatprep.subr.bf16.mxu1 %v2277_v3  ;;  %v2279_v5 = vld [vmem:[#allocation7 + $0x10] sm:$0xff]   ;;  %v2280_v6 = vld [vmem:[#allocation7 + $0x8] sm:$0xff]   ;;  %v2281_v7 = vld [vmem:[#allocation7] sm:$0xff]  }
  0x78   : > { %1865 = vmatprep.subr.bf16.mxu0 %v2268_v10  ;;  %v2282_v8 = vld [vmem:[#allocation7 + $0x78] sm:$0xff]   ;;  %v2714_v13 = vld [vmem:[#allocation8] ss:$0 sm:$0xff]  ;;  %v2283_v36 = vld [vmem:[#allocation7 + $0x70] sm:$0xff]  }
  0x79   : > { %v2284_v42 = vld [vmem:[#allocation7 + $0x68] sm:$0xff]   ;;  %v2285_v49 = vld [vmem:[#allocation7 + $0x60] sm:$0xff]   ;;  %v2286_v55 = vld [vmem:[#allocation7 + $0x58] sm:$0xff]  }
  0x7a   : > { %2006 = vmatpush3.bf16.msra.mxu1 %v2277_v3 }
  0x7b   : > { %1866 = vmatpush3.bf16.msra.mxu0 %v2269_v14  ;;  %2007 = vmatprep.subr.bf16.mxu1 %v2278_v4 }
  0x7c   : > { %1867 = vmatprep.subr.bf16.mxu0 %v2270_v15 }
  0x7e   : > { %2008 = vmatpush3.bf16.msra.mxu1 %v2278_v4 }
  0x7f   : > { %1868 = vmatpush3.bf16.msra.mxu0 %v2271_v16  ;;  %2009 = vmatprep.subr.bf16.mxu1 %v2279_v5 }
  0x80   : > { %1869 = vmatprep.subr.bf16.mxu0 %v2272_v17 }
  0x82   : > { %2010 = vmatpush3.bf16.msra.mxu1 %v2279_v5 }
  0x83   : > { %1870 = vmatpush3.bf16.msra.mxu0 %v2273_v18  ;;  %2011 = vmatprep.subr.bf16.mxu1 %v2280_v6 }
  0x86   : > { %476 = vmatmul.mubr.bf16.vlgmr.msra.gmra.mxu0 %v294_v26  ;;  %2012 = vmatpush3.bf16.msra.mxu1 %v2280_v6 }
  0x87   : > { %483 = vmatprep.mubr.bf16.mxu0 %v297_v27  ;;  %2013 = vmatprep.subr.bf16.mxu1 %v2281_v7 }
  0x8a   : > { %2014 = vmatpush3.bf16.msra.mxu1 %v2281_v7 }
  0x8b   : > { %2031 = vmatprep.subr.bf16.mxu1 %v2282_v8 }
  0x8e   : > { %484 = vmatmul.mubr.bf16.gmra.mxu0 %v296_v32 }
  0x8f   : > { %491 = vmatprep.mubr.bf16.mxu0 %v299_v33 }
  0x96   : > { %492 = vmatmul.mubr.bf16.gmra.mxu0 %v298_v38 }
  0x97   : > { %499 = vmatprep.mubr.bf16.mxu0 %v301_v39 }
  0x9e   : > { %500 = vmatmul.mubr.bf16.gmra.mxu0 %v300_v44 }
  0x9f   : > { %507 = vmatprep.mubr.bf16.mxu0 %v303_v45 }
  0xa6   : > { %508 = vmatmul.mubr.bf16.gmra.mxu0 %v302_v50 }
  0xa7   : > { %515 = vmatprep.mubr.bf16.mxu0 %v305_v51 }
  0xae   : > { %516 = vmatmul.mubr.bf16.gmra.mxu0 %v304_v56 }
  0xaf   : > { %523 = vmatprep.mubr.bf16.mxu0 %v307_v57 }
  0xb6   : > { %524 = vmatmul.mubr.bf16.gmra.mxu0 %v306_v62 }
  0xb7   : > { %531 = vmatprep.mubr.bf16.mxu0 %v309_v63 }
  0xbe   : > { %532 = vmatmul.mubr.bf16.gmra.mxu0 %v308_v2 }
 0x146   : > { %v1871_v9 = vpop.f32.mrf.mxu0 }
 0x148   : > { %v1872_v10 = vpop.f32.mrf.mxu0 }
 0x149   : > { %v1873_v11 = vadd.f32 %v1872_v10, %v1871_v9 }
 0x14a   : > { %v1874_v12 = vpop.f32.mrf.mxu0 }
 0x14b   : > { %v478_v16 = vadd.f32 %v1873_v11, %v2714_v13 }
 0x14c   : > { %v1875_v14 = vpop.f32.mrf.mxu0 }
 0x14d   : > { %v1876_v15 = vadd.f32 %v1875_v14, %v1874_v12  ;;  %v540_v21 = vmax.f32 %v478_v16, 0.0 }
 0x14e   : > { %v1877_v17 = vpop.f32.mrf.mxu0 }
 0x14f   : > { %v481_v18 = vadd.f32 %v1876_v15, %v2714_v13 }
 0x150   : > { %v1878_v19 = vpop.f32.mrf.mxu0 }
 0x151   : > { %v1879_v20 = vadd.f32 %v1878_v19, %v1877_v17  ;;  %v541_v22 = vmax.f32 %v481_v18, 0.0 }
 0x152   : > { %v1880_v23 = vpop.f32.mrf.mxu0 }
 0x153   : > { %v556_v24 = vpack.c.bf16 %v541_v22, %v540_v21  ;;  %v486_v26 = vadd.f32 %v1879_v20, %v2714_v13 }
 0x154   : > { %v1881_v25 = vpop.f32.mrf.mxu0 }
 0x155   : > { %v1882_v27 = vadd.f32 %v1881_v25, %v1880_v23  ;;  %2015 = vmatprep.mubr.bf16.mxu1 %v556_v24  ;;  %v542_v31 = vmax.f32 %v486_v26, 0.0 }
 0x156   : > { %v1883_v28 = vpop.f32.mrf.mxu0 }
 0x157   : > { %v489_v29 = vadd.f32 %v1882_v27, %v2714_v13 }
 0x158   : > { %v1884_v30 = vpop.f32.mrf.mxu0 }
 0x159   : > { %v543_v32 = vmax.f32 %v489_v29, 0.0  ;;  %v1885_v33 = vadd.f32 %v1884_v30, %v1883_v28 }
 0x15a   : > { %v1886_v34 = vpop.f32.mrf.mxu0 }
 0x15b   : > { %v557_v35 = vpack.c.bf16 %v543_v32, %v542_v31  ;;  %v494_v38 = vadd.f32 %v1885_v33, %v2714_v13 }
 0x15c   : > { %v1887_v37 = vpop.f32.mrf.mxu0 }
 0x15d   : > { %v1888_v39 = vadd.f32 %v1887_v37, %v1886_v34  ;;  %2016 = vmatmul.mubr.bf16.vlgmr.msra.gmra.mxu1 %v557_v35  ;;  %v544_v44 = vmax.f32 %v494_v38, 0.0 }
 0x15e   : > { %v1889_v40 = vpop.f32.mrf.mxu0  ;;  %2032 = vmatpush3.bf16.msra.mxu1 %v2282_v8 }
 0x15f   : > { %v497_v41 = vadd.f32 %v1888_v39, %v2714_v13  ;;  %2033 = vmatprep.subr.bf16.mxu1 %v2283_v36  ;;  %v2287_v39 = vld [vmem:[#allocation7 + $0x50] sm:$0xff]  }
 0x160   : > { %v1890_v43 = vpop.f32.mrf.mxu0 }
 0x161   : > { %v545_v45 = vmax.f32 %v497_v41, 0.0  ;;  %v1891_v46 = vadd.f32 %v1890_v43, %v1889_v40  ;;  %v2288_v40 = vld [vmem:[#allocation7 + $0x48] sm:$0xff]   ;;  %v2289_v41 = vld [vmem:[#allocation7 + $0x40] sm:$0xff]   ;;  %v2291_v43 = vld [vmem:[#allocation7 + $0xb0] sm:$0xff]  }
 0x162   : > { %v1892_v47 = vpop.f32.mrf.mxu0  ;;  %2034 = vmatpush3.bf16.msra.mxu1 %v2283_v36 }
 0x163   : > { %v558_v48 = vpack.c.bf16 %v545_v45, %v544_v44  ;;  %2035 = vmatprep.subr.bf16.mxu1 %v2284_v42  ;;  %v502_v51 = vadd.f32 %v1891_v46, %v2714_v13  ;;  %v2292_v44 = vld [vmem:[#allocation7 + $0xa8] sm:$0xff]   ;;  %v2294_v45 = vld [vmem:[#allocation7 + $0x98] sm:$0xff]  }
 0x164   : > { %v1893_v50 = vpop.f32.mrf.mxu0 }
 0x165   : > { %v1894_v52 = vadd.f32 %v1893_v50, %v1892_v47  ;;  %2019 = vmatprep.mubr.bf16.mxu1 %v558_v48  ;;  %v546_v57 = vmax.f32 %v502_v51, 0.0  ;;  %v1723_v48 = vld [vmem:[#allocation8 + $0x1] ss:$0 sm:$0xff] }
 0x166   : > { %v1895_v53 = vpop.f32.mrf.mxu0  ;;  %2036 = vmatpush3.bf16.msra.mxu1 %v2284_v42  ;;  %v2290_v42 = vld [vmem:[#allocation7 + $0xb8] sm:$0xff]  }
 0x167   : > { %v505_v54 = vadd.f32 %v1894_v52, %v2714_v13  ;;  %2037 = vmatprep.subr.bf16.mxu1 %v2285_v49  ;;  %2063 = vmatprep.subr.bf16.mxu0 %v2290_v42 }
 0x168   : > { %v1896_v56 = vpop.f32.mrf.mxu0  ;;  %2064 = vmatpush3.bf16.msra.mxu0 %v2290_v42  ;;  %v2297_v42 = vld [vmem:[#allocation7 + $0x80] sm:$0xff]  }
 0x169   : > { %v547_v58 = vmax.f32 %v505_v54, 0.0  ;;  %v1897_v59 = vadd.f32 %v1896_v56, %v1895_v53  ;;  %2065 = vmatprep.subr.bf16.mxu0 %v2291_v43 }
 0x16a   : > { %v1898_v60 = vpop.f32.mrf.mxu0  ;;  %2038 = vmatpush3.bf16.msra.mxu1 %v2285_v49 }
 0x16b   : > { %v559_v61 = vpack.c.bf16 %v547_v58, %v546_v57  ;;  %2039 = vmatprep.subr.bf16.mxu1 %v2286_v55  ;;  %v510_v63 = vadd.f32 %v1897_v59, %v2714_v13 }
 0x16c   : > { %v1899_v62 = vpop.f32.mrf.mxu0  ;;  %2066 = vmatpush3.bf16.msra.mxu0 %v2291_v43  ;;  %v2298_v43 = vld [vmem:[#allocation7 + $0xf8] sm:$0xff]  }
 0x16d   : > { %v1900_v0 = vadd.f32 %v1899_v62, %v1898_v60  ;;  %2020 = vmatmul.mubr.bf16.gmra.mxu1 %v559_v61  ;;  %v548_v4 = vmax.f32 %v510_v63, 0.0  ;;  %2067 = vmatprep.subr.bf16.mxu0 %v2292_v44 }
 0x16e   : > { %v1901_v1 = vpop.f32.mrf.mxu0  ;;  %2040 = vmatpush3.bf16.msra.mxu1 %v2286_v55 }
 0x16f   : > { %v513_v2 = vadd.f32 %v1900_v0, %v2714_v13  ;;  %2041 = vmatprep.subr.bf16.mxu1 %v2287_v39 }
 0x170   : > { %v1902_v3 = vpop.f32.mrf.mxu0  ;;  %2068 = vmatpush3.bf16.msra.mxu0 %v2292_v44  ;;  %v2299_v44 = vld [vmem:[#allocation7 + $0xf0] sm:$0xff]  }
 0x171   : > { %v549_v5 = vmax.f32 %v513_v2, 0.0  ;;  %v1903_v6 = vadd.f32 %v1902_v3, %v1901_v1 }
 0x172   : > { %v1904_v7 = vpop.f32.mrf.mxu0  ;;  %2042 = vmatpush3.bf16.msra.mxu1 %v2287_v39 }
 0x173   : > { %v560_v8 = vpack.c.bf16 %v549_v5, %v548_v4  ;;  %v518_v10 = vadd.f32 %v1903_v6, %v2714_v13  ;;  %2043 = vmatprep.subr.bf16.mxu1 %v2288_v40 }
 0x174   : > { %v1905_v9 = vpop.f32.mrf.mxu0 }
 0x175   : > { %v1906_v11 = vadd.f32 %v1905_v9, %v1904_v7  ;;  %2023 = vmatprep.mubr.bf16.mxu1 %v560_v8  ;;  %v550_v16 = vmax.f32 %v518_v10, 0.0 }
 0x176   : > { %v1907_v12 = vpop.f32.mrf.mxu0  ;;  %2044 = vmatpush3.bf16.msra.mxu1 %v2288_v40  ;;  %v2295_v40 = vld [vmem:[#allocation7 + $0x90] sm:$0xff]  }
 0x177   : > { %v521_v14 = vadd.f32 %v1906_v11, %v2714_v13  ;;  %2045 = vmatprep.subr.bf16.mxu1 %v2289_v41 }
 0x178   : > { %v1908_v15 = vpop.f32.mrf.mxu0 }
 0x179   : > { %v551_v17 = vmax.f32 %v521_v14, 0.0  ;;  %v1909_v18 = vadd.f32 %v1908_v15, %v1907_v12 }
 0x17a   : > { %v1910_v19 = vpop.f32.mrf.mxu0  ;;  %2046 = vmatpush3.bf16.msra.mxu1 %v2289_v41  ;;  %v2296_v41 = vld [vmem:[#allocation7 + $0x88] sm:$0xff]  }
 0x17b   : > { %v561_v20 = vpack.c.bf16 %v551_v17, %v550_v16  ;;  %v526_v22 = vadd.f32 %v1909_v18, %v2714_v13  ;;  %2095 = vmatprep.subr.bf16.mxu1 %v2298_v43 }
 0x17c   : > { %v1911_v21 = vpop.f32.mrf.mxu0 }
 0x17d   : > { %v1912_v23 = vadd.f32 %v1911_v21, %v1910_v19  ;;  %2024 = vmatmul.mubr.bf16.gmra.mxu1 %v561_v20  ;;  %v552_v27 = vmax.f32 %v526_v22, 0.0 }
 0x17e   : > { %v1913_v24 = vpop.f32.mrf.mxu0 }
 0x17f   : > { %v529_v25 = vadd.f32 %v1912_v23, %v2714_v13 }
 0x180   : > { %v1914_v26 = vpop.f32.mrf.mxu0 }
 0x181   : > { %v553_v28 = vmax.f32 %v529_v25, 0.0  ;;  %v1915_v29 = vadd.f32 %v1914_v26, %v1913_v24 }
 0x182   : > { %v1916_v30 = vpop.f32.mrf.mxu0 }
 0x183   : > { %v562_v31 = vpack.c.bf16 %v553_v28, %v552_v27  ;;  %v534_v33 = vadd.f32 %v1915_v29, %v2714_v13 }
 0x184   : > { %v1917_v32 = vpop.f32.mrf.mxu0 }
 0x185   : > { %v1918_v34 = vadd.f32 %v1917_v32, %v1916_v30  ;;  %2027 = vmatprep.mubr.bf16.mxu1 %v562_v31  ;;  %v554_v36 = vmax.f32 %v534_v33, 0.0 }
 0x187   : > { %v537_v35 = vadd.f32 %v1918_v34, %v2714_v13  ;;  %v2293_v13 = vld [vmem:[#allocation7 + $0xa0] sm:$0xff]  }
 0x188   : > { %2069 = vmatprep.subr.bf16.mxu0 %v2293_v13 }
 0x189   : > { %v555_v37 = vmax.f32 %v537_v35, 0.0  ;;  %2070 = vmatpush3.bf16.msra.mxu0 %v2293_v13  ;;  %v2300_v13 = vld [vmem:[#allocation7 + $0xe8] sm:$0xff]  }
 0x18a   : > { %2071 = vmatprep.subr.bf16.mxu0 %v2294_v45 }
 0x18b   : > { %v563_v38 = vpack.c.bf16 %v555_v37, %v554_v36 }
 0x18d   : > { %2028 = vmatmul.mubr.bf16.gmra.mxu1 %v563_v38  ;;  %2072 = vmatpush3.bf16.msra.mxu0 %v2294_v45  ;;  %v2301_v45 = vld [vmem:[#allocation7 + $0xe0] sm:$0xff]  }
 0x18e   : > { %2073 = vmatprep.subr.bf16.mxu0 %v2295_v40 }
 0x191   : > { %2074 = vmatpush3.bf16.msra.mxu0 %v2295_v40 }
 0x192   : > { %2075 = vmatprep.subr.bf16.mxu0 %v2296_v41 }
 0x195   : > { %2076 = vmatpush3.bf16.msra.mxu0 %v2296_v41  ;;  %v2303_v41 = vld [vmem:[#allocation7 + $0xd0] sm:$0xff]  }
 0x196   : > { %2077 = vmatprep.subr.bf16.mxu0 %v2297_v42 }
 0x199   : > { %2078 = vmatpush3.bf16.msra.mxu0 %v2297_v42  ;;  %v2304_v42 = vld [vmem:[#allocation7 + $0xc8] sm:$0xff]  }
 0x21d   : > { %v2017_v46 = vpop.f32.mrf.mxu1 }
 0x21e   : > { %v676_v52 = vadd.f32 %v2017_v46, %v1723_v48  ;;  %v2302_v46 = vld [vmem:[#allocation7 + $0xd8] sm:$0xff]  }
 0x21f   : > { %v667_v47 = vpop.f32.mrf.mxu1 }
 0x220   : > { %v668_v50 = vadd.f32 %v1723_v48, %v667_v47  ;;  %v732_v58 = vmax.f32 %v676_v52, 0.0 }
 0x221   : > { %v2018_v49 = vpop.f32.mrf.mxu1 }
 0x222   : > { %v679_v51 = vadd.f32 %v2018_v49, %v1723_v48  ;;  %v730_v56 = vmax.f32 %v668_v50, 0.0  ;;  %v1732_v49 = vld [vmem:[#allocation8 + $0x2] ss:$0 sm:$0xff] }
 0x223   : > { %v670_v53 = vpop.f32.mrf.mxu1 }
 0x224   : > { %v671_v54 = vadd.f32 %v1723_v48, %v670_v53  ;;  %v733_v55 = vmax.f32 %v679_v51, 0.0 }
 0x226   : > { %v731_v57 = vmax.f32 %v671_v54, 0.0  ;;  %v747_v60 = vpack.c.bf16 %v733_v55, %v732_v58 }
 0x228   : > { %v746_v59 = vpack.c.bf16 %v731_v57, %v730_v56 }
 0x22a   : > { %2047 = vmatprep.mubr.bf16.mxu1 %v746_v59 }
 0x22b   : > { %2048 = vmatmul.mubr.bf16.vlgmr.msra.gmra.mxu1 %v747_v60 }
 0x22c   : > { %2096 = vmatpush3.bf16.msra.mxu1 %v2298_v43  ;;  %v2305_v43 = vld [vmem:[#allocation7 + $0xc0] sm:$0xff]  }
 0x22d   : > { %v2021_v61 = vpop.f32.mrf.mxu1  ;;  %2097 = vmatprep.subr.bf16.mxu1 %v2299_v44 }
 0x22e   : > { %v692_v2 = vadd.f32 %v2021_v61, %v1723_v48 }
 0x22f   : > { %v683_v62 = vpop.f32.mrf.mxu1 }
 0x230   : > { %v684_v0 = vadd.f32 %v1723_v48, %v683_v62  ;;  %v736_v8 = vmax.f32 %v692_v2, 0.0  ;;  %2098 = vmatpush3.bf16.msra.mxu1 %v2299_v44  ;;  %v2306_v44 = vld [vmem:[#allocation7 + $0x138] sm:$0xff]  }
 0x231   : > { %v2022_v63 = vpop.f32.mrf.mxu1  ;;  %2099 = vmatprep.subr.bf16.mxu1 %v2300_v13  ;;  %2127 = vmatprep.subr.bf16.mxu0 %v2306_v44 }
 0x232   : > { %v695_v1 = vadd.f32 %v2022_v63, %v1723_v48  ;;  %v734_v6 = vmax.f32 %v684_v0, 0.0 }
 0x233   : > { %v686_v3 = vpop.f32.mrf.mxu1 }
 0x234   : > { %v687_v4 = vadd.f32 %v1723_v48, %v686_v3  ;;  %v737_v5 = vmax.f32 %v695_v1, 0.0  ;;  %2100 = vmatpush3.bf16.msra.mxu1 %v2300_v13  ;;  %v2307_v13 = vld [vmem:[#allocation7 + $0x130] sm:$0xff]  }
 0x235   : > { %2101 = vmatprep.subr.bf16.mxu1 %v2301_v45 }
 0x236   : > { %v735_v7 = vmax.f32 %v687_v4, 0.0  ;;  %v749_v10 = vpack.c.bf16 %v737_v5, %v736_v8 }
 0x238   : > { %v748_v9 = vpack.c.bf16 %v735_v7, %v734_v6  ;;  %2102 = vmatpush3.bf16.msra.mxu1 %v2301_v45  ;;  %v2308_v45 = vld [vmem:[#allocation7 + $0x128] sm:$0xff]  }
 0x239   : > { %2103 = vmatprep.subr.bf16.mxu1 %v2302_v46 }
 0x23a   : > { %2051 = vmatprep.mubr.bf16.mxu1 %v748_v9 }
 0x23b   : > { %2052 = vmatmul.mubr.bf16.gmra.mxu1 %v749_v10 }
 0x23c   : > { %2104 = vmatpush3.bf16.msra.mxu1 %v2302_v46  ;;  %v2309_v46 = vld [vmem:[#allocation7 + $0x120] sm:$0xff]  }
 0x23d   : > { %v2025_v11 = vpop.f32.mrf.mxu1  ;;  %2105 = vmatprep.subr.bf16.mxu1 %v2303_v41 }
 0x23e   : > { %v708_v17 = vadd.f32 %v2025_v11, %v1723_v48 }
 0x23f   : > { %v699_v12 = vpop.f32.mrf.mxu1 }
 0x240   : > { %v700_v15 = vadd.f32 %v1723_v48, %v699_v12  ;;  %v740_v23 = vmax.f32 %v708_v17, 0.0  ;;  %2106 = vmatpush3.bf16.msra.mxu1 %v2303_v41 }
 0x241   : > { %v2026_v14 = vpop.f32.mrf.mxu1  ;;  %2107 = vmatprep.subr.bf16.mxu1 %v2304_v42 }
 0x242   : > { %v711_v16 = vadd.f32 %v2026_v14, %v1723_v48  ;;  %v738_v21 = vmax.f32 %v700_v15, 0.0 }
 0x243   : > { %v702_v18 = vpop.f32.mrf.mxu1 }
 0x244   : > { %v703_v19 = vadd.f32 %v1723_v48, %v702_v18  ;;  %v741_v20 = vmax.f32 %v711_v16, 0.0  ;;  %2108 = vmatpush3.bf16.msra.mxu1 %v2304_v42  ;;  %v2311_v42 = vld [vmem:[#allocation7 + $0x110] sm:$0xff]  }
 0x245   : > { %2109 = vmatprep.subr.bf16.mxu1 %v2305_v43 }
 0x246   : > { %v739_v22 = vmax.f32 %v703_v19, 0.0  ;;  %v751_v25 = vpack.c.bf16 %v741_v20, %v740_v23 }
 0x248   : > { %v750_v24 = vpack.c.bf16 %v739_v22, %v738_v21  ;;  %2110 = vmatpush3.bf16.msra.mxu1 %v2305_v43  ;;  %v2312_v43 = vld [vmem:[#allocation7 + $0x108] sm:$0xff]  }
 0x249   : > { %2159 = vmatprep.subr.bf16.mxu1 %v2306_v44 }
 0x24a   : > { %2055 = vmatprep.mubr.bf16.mxu1 %v750_v24 }
 0x24b   : > { %2056 = vmatmul.mubr.bf16.gmra.mxu1 %v751_v25 }
 0x24d   : > { %v2029_v26 = vpop.f32.mrf.mxu1 }
 0x24e   : > { %v724_v31 = vadd.f32 %v2029_v26, %v1723_v48 }
 0x24f   : > { %v715_v27 = vpop.f32.mrf.mxu1 }
 0x250   : > { %v716_v29 = vadd.f32 %v1723_v48, %v715_v27  ;;  %v744_v37 = vmax.f32 %v724_v31, 0.0 }
 0x251   : > { %v2030_v28 = vpop.f32.mrf.mxu1 }
 0x252   : > { %v727_v30 = vadd.f32 %v2030_v28, %v1723_v48  ;;  %v742_v35 = vmax.f32 %v716_v29, 0.0 }
 0x253   : > { %v718_v32 = vpop.f32.mrf.mxu1 }
 0x254   : > { %v719_v33 = vadd.f32 %v1723_v48, %v718_v32  ;;  %v745_v34 = vmax.f32 %v727_v30, 0.0 }
 0x256   : > { %v743_v36 = vmax.f32 %v719_v33, 0.0  ;;  %v753_v39 = vpack.c.bf16 %v745_v34, %v744_v37 }
 0x258   : > { %v752_v38 = vpack.c.bf16 %v743_v36, %v742_v35 }
 0x25a   : > { %2059 = vmatprep.mubr.bf16.mxu1 %v752_v38 }
 0x25b   : > { %2060 = vmatmul.mubr.bf16.gmra.mxu1 %v753_v39 }
 0x2eb   : > { %v2049_v47 = vpop.f32.mrf.mxu1 }
 0x2ec   : > { %v867_v53 = vadd.f32 %v2049_v47, %v1732_v49  ;;  %v2310_v47 = vld [vmem:[#allocation7 + $0x118] sm:$0xff]  }
 0x2ed   : > { %v858_v48 = vpop.f32.mrf.mxu1 }
 0x2ee   : > { %v859_v51 = vadd.f32 %v1732_v49, %v858_v48  ;;  %v923_v59 = vmax.f32 %v867_v53, 0.0 }
 0x2ef   : > { %v2050_v50 = vpop.f32.mrf.mxu1 }
 0x2f0   : > { %v870_v52 = vadd.f32 %v2050_v50, %v1732_v49  ;;  %v921_v57 = vmax.f32 %v859_v51, 0.0  ;;  %v2732_v50 = vld [vmem:[#allocation8 + $0x3] ss:$0 sm:$0xff] }
 0x2f1   : > { %v861_v54 = vpop.f32.mrf.mxu1 }
 0x2f2   : > { %v862_v55 = vadd.f32 %v1732_v49, %v861_v54  ;;  %v924_v56 = vmax.f32 %v870_v52, 0.0 }
 0x2f4   : > { %v922_v58 = vmax.f32 %v862_v55, 0.0  ;;  %v938_v61 = vpack.c.bf16 %v924_v56, %v923_v59 }
 0x2f6   : > { %v937_v60 = vpack.c.bf16 %v922_v58, %v921_v57 }
 0x2f8   : > { %2079 = vmatprep.mubr.bf16.mxu0 %v937_v60 }
 0x2f9   : > { %2080 = vmatmul.mubr.bf16.vlgmr.msra.gmra.mxu0 %v938_v61 }
 0x2fa   : > { %2128 = vmatpush3.bf16.msra.mxu0 %v2306_v44 }
 0x2fb   : > { %v2053_v62 = vpop.f32.mrf.mxu1  ;;  %2129 = vmatprep.subr.bf16.mxu0 %v2307_v13 }
 0x2fc   : > { %v883_v3 = vadd.f32 %v2053_v62, %v1732_v49 }
 0x2fd   : > { %v874_v63 = vpop.f32.mrf.mxu1 }
 0x2fe   : > { %v875_v1 = vadd.f32 %v1732_v49, %v874_v63  ;;  %v927_v9 = vmax.f32 %v883_v3, 0.0  ;;  %2130 = vmatpush3.bf16.msra.mxu0 %v2307_v13 }
 0x2ff   : > { %v2054_v0 = vpop.f32.mrf.mxu1  ;;  %2131 = vmatprep.subr.bf16.mxu0 %v2308_v45 }
 0x300   : > { %v886_v2 = vadd.f32 %v2054_v0, %v1732_v49  ;;  %v925_v7 = vmax.f32 %v875_v1, 0.0 }
 0x301   : > { %v877_v4 = vpop.f32.mrf.mxu1 }
 0x302   : > { %v878_v5 = vadd.f32 %v1732_v49, %v877_v4  ;;  %v928_v6 = vmax.f32 %v886_v2, 0.0  ;;  %2132 = vmatpush3.bf16.msra.mxu0 %v2308_v45 }
 0x303   : > { %2133 = vmatprep.subr.bf16.mxu0 %v2309_v46 }
 0x304   : > { %v926_v8 = vmax.f32 %v878_v5, 0.0  ;;  %v940_v11 = vpack.c.bf16 %v928_v6, %v927_v9 }
 0x306   : > { %v939_v10 = vpack.c.bf16 %v926_v8, %v925_v7  ;;  %2134 = vmatpush3.bf16.msra.mxu0 %v2309_v46 }
 0x307   : > { %2135 = vmatprep.subr.bf16.mxu0 %v2310_v47 }
 0x308   : > { %2083 = vmatprep.mubr.bf16.mxu0 %v939_v10 }
 0x309   : > { %2084 = vmatmul.mubr.bf16.gmra.mxu0 %v940_v11 }
 0x30a   : > { %2136 = vmatpush3.bf16.msra.mxu0 %v2310_v47 }
 0x30b   : > { %v2057_v12 = vpop.f32.mrf.mxu1  ;;  %2137 = vmatprep.subr.bf16.mxu0 %v2311_v42 }
 0x30c   : > { %v899_v18 = vadd.f32 %v2057_v12, %v1732_v49 }
 0x30d   : > { %v890_v14 = vpop.f32.mrf.mxu1 }
 0x30e   : > { %v891_v16 = vadd.f32 %v1732_v49, %v890_v14  ;;  %v931_v24 = vmax.f32 %v899_v18, 0.0  ;;  %2138 = vmatpush3.bf16.msra.mxu0 %v2311_v42 }
 0x30f   : > { %v2058_v15 = vpop.f32.mrf.mxu1  ;;  %2139 = vmatprep.subr.bf16.mxu0 %v2312_v43 }
 0x310   : > { %v902_v17 = vadd.f32 %v2058_v15, %v1732_v49  ;;  %v929_v22 = vmax.f32 %v891_v16, 0.0 }
 0x311   : > { %v893_v19 = vpop.f32.mrf.mxu1 }
 0x312   : > { %v894_v20 = vadd.f32 %v1732_v49, %v893_v19  ;;  %v932_v21 = vmax.f32 %v902_v17, 0.0  ;;  %2140 = vmatpush3.bf16.msra.mxu0 %v2312_v43 }
 0x314   : > { %v930_v23 = vmax.f32 %v894_v20, 0.0  ;;  %v942_v26 = vpack.c.bf16 %v932_v21, %v931_v24 }
 0x316   : > { %v941_v25 = vpack.c.bf16 %v930_v23, %v929_v22 }
 0x318   : > { %2087 = vmatprep.mubr.bf16.mxu0 %v941_v25 }
 0x319   : > { %2088 = vmatmul.mubr.bf16.gmra.mxu0 %v942_v26 }
 0x31b   : > { %v2061_v27 = vpop.f32.mrf.mxu1 }
 0x31c   : > { %v915_v32 = vadd.f32 %v2061_v27, %v1732_v49 }
 0x31d   : > { %v906_v28 = vpop.f32.mrf.mxu1 }
 0x31e   : > { %v907_v30 = vadd.f32 %v1732_v49, %v906_v28  ;;  %v935_v38 = vmax.f32 %v915_v32, 0.0 }
 0x31f   : > { %v2062_v29 = vpop.f32.mrf.mxu1 }
 0x320   : > { %v918_v31 = vadd.f32 %v2062_v29, %v1732_v49  ;;  %v933_v36 = vmax.f32 %v907_v30, 0.0 }
 0x321   : > { %v909_v33 = vpop.f32.mrf.mxu1 }
 0x322   : > { %v910_v34 = vadd.f32 %v1732_v49, %v909_v33  ;;  %v936_v35 = vmax.f32 %v918_v31, 0.0 }
 0x324   : > { %v934_v37 = vmax.f32 %v910_v34, 0.0  ;;  %v944_v40 = vpack.c.bf16 %v936_v35, %v935_v38 }
 0x326   : > { %v943_v39 = vpack.c.bf16 %v934_v37, %v933_v36 }
 0x328   : > { %2091 = vmatprep.mubr.bf16.mxu0 %v943_v39 }
 0x329   : > { %2092 = vmatmul.mubr.bf16.gmra.mxu0 %v944_v40 }
 0x3b9   : > { %v2081_v48 = vpop.f32.mrf.mxu0 }
 0x3ba   : > { %v1058_v54 = vadd.f32 %v2081_v48, %v2732_v50 }
 0x3bb   : > { %v1049_v49 = vpop.f32.mrf.mxu0 }
 0x3bc   : > { %v1050_v52 = vadd.f32 %v2732_v50, %v1049_v49  ;;  %v1114_v60 = vmax.f32 %v1058_v54, 0.0 }
 0x3bd   : > { %v2082_v51 = vpop.f32.mrf.mxu0 }
 0x3be   : > { %v1061_v53 = vadd.f32 %v2082_v51, %v2732_v50  ;;  %v1112_v58 = vmax.f32 %v1050_v52, 0.0 }
 0x3bf   : > { %v1052_v55 = vpop.f32.mrf.mxu0 }
 0x3c0   : > { %v1053_v56 = vadd.f32 %v2732_v50, %v1052_v55  ;;  %v1115_v57 = vmax.f32 %v1061_v53, 0.0 }
 0x3c2   : > { %v1113_v59 = vmax.f32 %v1053_v56, 0.0  ;;  %v1129_v62 = vpack.c.bf16 %v1115_v57, %v1114_v60 }
 0x3c4   : > { %v1128_v61 = vpack.c.bf16 %v1113_v59, %v1112_v58 }
 0x3c6   : > { %2111 = vmatprep.mubr.bf16.mxu1 %v1128_v61 }
 0x3c7   : > { %2112 = vmatmul.mubr.bf16.vlgmr.msra.gmra.mxu1 %v1129_v62 }
 0x3c8   : > { %2167 = vmatpush3.bf16.msra.mxu1 %v2306_v44  ;;  %v2313_v44 = vld [vmem:[#allocation7 + $0x100] sm:$0xff]  }
 0x3c9   : > { %v2085_v63 = vpop.f32.mrf.mxu0  ;;  %2160 = vmatprep.subr.bf16.mxu1 %v2307_v13  ;;  %2141 = vmatprep.subr.bf16.mxu0 %v2313_v44 }
 0x3ca   : > { %v1074_v4 = vadd.f32 %v2085_v63, %v2732_v50  ;;  %2142 = vmatpush3.bf16.msra.mxu0 %v2313_v44 }
 0x3cb   : > { %v1065_v0 = vpop.f32.mrf.mxu0 }
 0x3cc   : > { %2168 = vmatpush3.bf16.msra.mxu1 %v2307_v13  ;;  %v1066_v2 = vadd.f32 %v2732_v50, %v1065_v0  ;;  %v1118_v10 = vmax.f32 %v1074_v4, 0.0 }
 0x3cd   : > { %v2086_v1 = vpop.f32.mrf.mxu0  ;;  %2161 = vmatprep.subr.bf16.mxu1 %v2308_v45 }
 0x3ce   : > { %v1077_v3 = vadd.f32 %v2086_v1, %v2732_v50  ;;  %v1116_v8 = vmax.f32 %v1066_v2, 0.0 }
 0x3cf   : > { %v1068_v5 = vpop.f32.mrf.mxu0 }
 0x3d0   : > { %v1069_v6 = vadd.f32 %v2732_v50, %v1068_v5  ;;  %2169 = vmatpush3.bf16.msra.mxu1 %v2308_v45  ;;  %v1119_v7 = vmax.f32 %v1077_v3, 0.0 }
 0x3d1   : > { %2162 = vmatprep.subr.bf16.mxu1 %v2309_v46 }
 0x3d2   : > { %v1117_v9 = vmax.f32 %v1069_v6, 0.0  ;;  %v1131_v12 = vpack.c.bf16 %v1119_v7, %v1118_v10 }
 0x3d4   : > { %v1130_v11 = vpack.c.bf16 %v1117_v9, %v1116_v8  ;;  %2170 = vmatpush3.bf16.msra.mxu1 %v2309_v46  ;;  %v1750_v46 = vld [vmem:[#allocation8 + $0x4] ss:$0 sm:$0xff] }
 0x3d5   : > { %2163 = vmatprep.subr.bf16.mxu1 %v2310_v47 }
 0x3d6   : > { %2115 = vmatprep.mubr.bf16.mxu1 %v1130_v11 }
 0x3d7   : > { %2116 = vmatmul.mubr.bf16.gmra.mxu1 %v1131_v12 }
 0x3d8   : > { %2171 = vmatpush3.bf16.msra.mxu1 %v2310_v47 }
 0x3d9   : > { %v2089_v14 = vpop.f32.mrf.mxu0  ;;  %2164 = vmatprep.subr.bf16.mxu1 %v2311_v42 }
 0x3da   : > { %v1090_v19 = vadd.f32 %v2089_v14, %v2732_v50 }
 0x3db   : > { %v1081_v15 = vpop.f32.mrf.mxu0 }
 0x3dc   : > { %v1082_v17 = vadd.f32 %v2732_v50, %v1081_v15  ;;  %v1122_v25 = vmax.f32 %v1090_v19, 0.0  ;;  %2172 = vmatpush3.bf16.msra.mxu1 %v2311_v42 }
 0x3dd   : > { %v2090_v16 = vpop.f32.mrf.mxu0  ;;  %2165 = vmatprep.subr.bf16.mxu1 %v2312_v43 }
 0x3de   : > { %v1093_v18 = vadd.f32 %v2090_v16, %v2732_v50  ;;  %v1120_v23 = vmax.f32 %v1082_v17, 0.0 }
 0x3df   : > { %v1084_v20 = vpop.f32.mrf.mxu0 }
 0x3e0   : > { %v1085_v21 = vadd.f32 %v2732_v50, %v1084_v20  ;;  %v1123_v22 = vmax.f32 %v1093_v18, 0.0  ;;  %2173 = vmatpush3.bf16.msra.mxu1 %v2312_v43 }
 0x3e1   : > { %2166 = vmatprep.subr.bf16.mxu1 %v2313_v44 }
 0x3e2   : > { %v1121_v24 = vmax.f32 %v1085_v21, 0.0  ;;  %v1133_v27 = vpack.c.bf16 %v1123_v22, %v1122_v25 }
 0x3e4   : > { %v1132_v26 = vpack.c.bf16 %v1121_v24, %v1120_v23  ;;  %2174 = vmatpush3.bf16.msra.mxu1 %v2313_v44 }
 0x3e6   : > { %2119 = vmatprep.mubr.bf16.mxu1 %v1132_v26 }
 0x3e7   : > { %2120 = vmatmul.mubr.bf16.gmra.mxu1 %v1133_v27 }
 0x3e9   : > { %v2093_v28 = vpop.f32.mrf.mxu0 }
 0x3ea   : > { %v1106_v33 = vadd.f32 %v2093_v28, %v2732_v50 }
 0x3eb   : > { %v1097_v29 = vpop.f32.mrf.mxu0 }
 0x3ec   : > { %v1098_v31 = vadd.f32 %v2732_v50, %v1097_v29  ;;  %v1126_v39 = vmax.f32 %v1106_v33, 0.0 }
 0x3ed   : > { %v2094_v30 = vpop.f32.mrf.mxu0 }
 0x3ee   : > { %v1109_v32 = vadd.f32 %v2094_v30, %v2732_v50  ;;  %v1124_v37 = vmax.f32 %v1098_v31, 0.0 }
 0x3ef   : > { %v1100_v34 = vpop.f32.mrf.mxu0 }
 0x3f0   : > { %v1101_v35 = vadd.f32 %v2732_v50, %v1100_v34  ;;  %v1127_v36 = vmax.f32 %v1109_v32, 0.0 }
 0x3f2   : > { %v1125_v38 = vmax.f32 %v1101_v35, 0.0  ;;  %v1135_v41 = vpack.c.bf16 %v1127_v36, %v1126_v39  ;;  %v1759_v39 = vld [vmem:[#allocation8 + $0x5] ss:$0 sm:$0xff] }
 0x3f4   : > { %v1134_v40 = vpack.c.bf16 %v1125_v38, %v1124_v37 }
 0x3f6   : > { %2123 = vmatprep.mubr.bf16.mxu1 %v1134_v40 }
 0x3f7   : > { %2124 = vmatmul.mubr.bf16.gmra.mxu1 %v1135_v41 }
 0x487   : > { %v2113_v13 = vpop.f32.mrf.mxu1 }
 0x488   : > { %v1249_v50 = vadd.f32 %v2113_v13, %v1750_v46 }
 0x489   : > { %v1240_v45 = vpop.f32.mrf.mxu1 }
 0x48a   : > { %v1241_v48 = vadd.f32 %v1750_v46, %v1240_v45  ;;  %v1305_v56 = vmax.f32 %v1249_v50, 0.0 }
 0x48b   : > { %v2114_v47 = vpop.f32.mrf.mxu1 }
 0x48c   : > { %v1252_v49 = vadd.f32 %v2114_v47, %v1750_v46  ;;  %v1303_v54 = vmax.f32 %v1241_v48, 0.0 }
 0x48d   : > { %v1243_v51 = vpop.f32.mrf.mxu1 }
 0x48e   : > { %v1244_v52 = vadd.f32 %v1750_v46, %v1243_v51  ;;  %v1306_v53 = vmax.f32 %v1252_v49, 0.0 }
 0x490   : > { %v1304_v55 = vmax.f32 %v1244_v52, 0.0  ;;  %v1320_v58 = vpack.c.bf16 %v1306_v53, %v1305_v56 }
 0x492   : > { %v1319_v57 = vpack.c.bf16 %v1304_v55, %v1303_v54 }
 0x494   : > { %2143 = vmatprep.mubr.bf16.mxu0 %v1319_v57 }
 0x495   : > { %2144 = vmatmul.mubr.bf16.vlgmr.msra.gmra.mxu0 %v1320_v58 }
 0x497   : > { %v2117_v59 = vpop.f32.mrf.mxu1 }
 0x498   : > { %v1265_v0 = vadd.f32 %v2117_v59, %v1750_v46 }
 0x499   : > { %v1256_v60 = vpop.f32.mrf.mxu1 }
 0x49a   : > { %v1257_v62 = vadd.f32 %v1750_v46, %v1256_v60  ;;  %v1309_v6 = vmax.f32 %v1265_v0, 0.0 }
 0x49b   : > { %v2118_v61 = vpop.f32.mrf.mxu1 }
 0x49c   : > { %v1268_v63 = vadd.f32 %v2118_v61, %v1750_v46  ;;  %v1307_v4 = vmax.f32 %v1257_v62, 0.0 }
 0x49d   : > { %v1259_v1 = vpop.f32.mrf.mxu1 }
 0x49e   : > { %v1260_v2 = vadd.f32 %v1750_v46, %v1259_v1  ;;  %v1310_v3 = vmax.f32 %v1268_v63, 0.0 }
 0x4a0   : > { %v1308_v5 = vmax.f32 %v1260_v2, 0.0  ;;  %v1322_v8 = vpack.c.bf16 %v1310_v3, %v1309_v6 }
 0x4a2   : > { %v1321_v7 = vpack.c.bf16 %v1308_v5, %v1307_v4 }
 0x4a4   : > { %2147 = vmatprep.mubr.bf16.mxu0 %v1321_v7 }
 0x4a5   : > { %2148 = vmatmul.mubr.bf16.gmra.mxu0 %v1322_v8 }
 0x4a7   : > { %v2121_v9 = vpop.f32.mrf.mxu1 }
 0x4a8   : > { %v1281_v15 = vadd.f32 %v2121_v9, %v1750_v46 }
 0x4a9   : > { %v1272_v10 = vpop.f32.mrf.mxu1 }
 0x4aa   : > { %v1273_v12 = vadd.f32 %v1750_v46, %v1272_v10  ;;  %v1313_v21 = vmax.f32 %v1281_v15, 0.0 }
 0x4ab   : > { %v2122_v11 = vpop.f32.mrf.mxu1 }
 0x4ac   : > { %v1284_v14 = vadd.f32 %v2122_v11, %v1750_v46  ;;  %v1311_v19 = vmax.f32 %v1273_v12, 0.0 }
 0x4ad   : > { %v1275_v16 = vpop.f32.mrf.mxu1 }
 0x4ae   : > { %v1276_v17 = vadd.f32 %v1750_v46, %v1275_v16  ;;  %v1314_v18 = vmax.f32 %v1284_v14, 0.0 }
 0x4b0   : > { %v1312_v20 = vmax.f32 %v1276_v17, 0.0  ;;  %v1324_v23 = vpack.c.bf16 %v1314_v18, %v1313_v21 }
 0x4b2   : > { %v1323_v22 = vpack.c.bf16 %v1312_v20, %v1311_v19 }
 0x4b4   : > { %2151 = vmatprep.mubr.bf16.mxu1 %v1323_v22 }
 0x4b5   : > { %2152 = vmatmul.mubr.bf16.vlgmr.msra.gmra.mxu1 %v1324_v23 }
 0x4b7   : > { %v2125_v24 = vpop.f32.mrf.mxu1 }
 0x4b8   : > { %v1297_v29 = vadd.f32 %v2125_v24, %v1750_v46 }
 0x4b9   : > { %v1288_v25 = vpop.f32.mrf.mxu1 }
 0x4ba   : > { %v1289_v27 = vadd.f32 %v1750_v46, %v1288_v25  ;;  %v1317_v35 = vmax.f32 %v1297_v29, 0.0 }
 0x4bb   : > { %v2126_v26 = vpop.f32.mrf.mxu1 }
 0x4bc   : > { %v1300_v28 = vadd.f32 %v2126_v26, %v1750_v46  ;;  %v1315_v33 = vmax.f32 %v1289_v27, 0.0 }
 0x4bd   : > { %v1291_v30 = vpop.f32.mrf.mxu1 }
 0x4be   : > { %v1292_v31 = vadd.f32 %v1750_v46, %v1291_v30  ;;  %v1318_v32 = vmax.f32 %v1300_v28, 0.0 }
 0x4c0   : > { %v1316_v34 = vmax.f32 %v1292_v31, 0.0  ;;  %v1326_v37 = vpack.c.bf16 %v1318_v32, %v1317_v35 }
 0x4c2   : > { %v1325_v36 = vpack.c.bf16 %v1316_v34, %v1315_v33 }
 0x4c4   : > { %2155 = vmatprep.mubr.bf16.mxu1 %v1325_v36 }
 0x4c5   : > { %2156 = vmatmul.mubr.bf16.gmra.mxu1 %v1326_v37 }
 0x555   : > { %v2145_v38 = vpop.f32.mrf.mxu0 }
 0x556   : > { %v1440_v42 = vadd.f32 %v2145_v38, %v1759_v39 }
 0x557   : > { %v1431_v40 = vpop.f32.mrf.mxu0 }
 0x558   : > { %v1432_v13 = vadd.f32 %v1759_v39, %v1431_v40 }
 0x559   : > { %v2146_v41 = vpop.f32.mrf.mxu0 }
 0x55a   : > { %v1443_v43 = vadd.f32 %v2146_v41, %v1759_v39 }
 0x55b   : > { %v1434_v44 = vpop.f32.mrf.mxu0 }
 0x55c   : > { %v1816_v45 = vpack.c.bf16 %v1443_v43, %v1440_v42  ;;  %v1435_v47 = vadd.f32 %v1759_v39, %v1434_v44 }
 0x55e   : > { %1848 = vst [vmem:[%s2751_s23 + $0x8] sm:$0xff] %v1816_v45   ;;  %v1811_v46 = vpack.c.bf16 %v1435_v47, %v1432_v13 }
 0x560   : > { %1812 = vst [vmem:[%s2751_s23] sm:$0xff] %v1811_v46  }
 0x565   : > { %v2149_v48 = vpop.f32.mrf.mxu0 }
 0x566   : > { %v1456_v51 = vadd.f32 %v2149_v48, %v1759_v39 }
 0x567   : > { %v1447_v49 = vpop.f32.mrf.mxu0 }
 0x568   : > { %v1448_v54 = vadd.f32 %v1759_v39, %v1447_v49 }
 0x569   : > { %v2150_v50 = vpop.f32.mrf.mxu0 }
 0x56a   : > { %v1459_v52 = vadd.f32 %v2150_v50, %v1759_v39 }
 0x56b   : > { %v1450_v53 = vpop.f32.mrf.mxu0 }
 0x56c   : > { %v1826_v55 = vpack.c.bf16 %v1459_v52, %v1456_v51  ;;  %v1451_v56 = vadd.f32 %v1759_v39, %v1450_v53 }
 0x56e   : > { %1850 = vst [vmem:[%s2751_s23 + $0x18] sm:$0xff] %v1826_v55   ;;  %v1821_v57 = vpack.c.bf16 %v1451_v56, %v1448_v54 }
 0x570   : > { %1849 = vst [vmem:[%s2751_s23 + $0x10] sm:$0xff] %v1821_v57  }
 0x575   : > { %v2153_v58 = vpop.f32.mrf.mxu1 }
 0x576   : > { %v1472_v61 = vadd.f32 %v2153_v58, %v1759_v39 }
 0x577   : > { %v1463_v59 = vpop.f32.mrf.mxu1 }
 0x578   : > { %v1464_v0 = vadd.f32 %v1759_v39, %v1463_v59 }
 0x579   : > { %v2154_v60 = vpop.f32.mrf.mxu1 }
 0x57a   : > { %v1475_v62 = vadd.f32 %v2154_v60, %v1759_v39 }
 0x57b   : > { %v1466_v63 = vpop.f32.mrf.mxu1 }
 0x57c   : > { %v1836_v1 = vpack.c.bf16 %v1475_v62, %v1472_v61  ;;  %v1467_v2 = vadd.f32 %v1759_v39, %v1466_v63 }
 0x57e   : > { %1852 = vst [vmem:[%s2751_s23 + $0x28] sm:$0xff] %v1836_v1   ;;  %v1831_v3 = vpack.c.bf16 %v1467_v2, %v1464_v0 }
 0x580   : > { %1851 = vst [vmem:[%s2751_s23 + $0x20] sm:$0xff] %v1831_v3  }
 0x585   : > { %v2157_v4 = vpop.f32.mrf.mxu1 }
 0x586   : > { %v1488_v7 = vadd.f32 %v2157_v4, %v1759_v39 }
 0x587   : > { %v1479_v5 = vpop.f32.mrf.mxu1 }
 0x588   : > { %v1480_v10 = vadd.f32 %v1759_v39, %v1479_v5 }
 0x589   : > { %v2158_v6 = vpop.f32.mrf.mxu1 }
 0x58a   : > { %v1491_v8 = vadd.f32 %v2158_v6, %v1759_v39 }
 0x58b   : > { %v1482_v9 = vpop.f32.mrf.mxu1 }
 0x58c   : > { %v1846_v11 = vpack.c.bf16 %v1491_v8, %v1488_v7  ;;  %v1483_v12 = vadd.f32 %v1759_v39, %v1482_v9 }
 0x58e   : > { %1854 = vst [vmem:[%s2751_s23 + $0x38] sm:$0xff] %v1846_v11   ;;  %v1841_v14 = vpack.c.bf16 %v1483_v12, %v1480_v10 }
 0x590   : > { %1853 = vst [vmem:[%s2751_s23 + $0x30] sm:$0xff] %v1841_v14  }
 0x591   : > { %2433 = shalt.err (!%p2430_p9)
}
 0x592   : > { %s2434_s9 = scalar_lea.hbm %s2766_s5, 1024  ;;  %s2438_s25 = scalar_lea.hbm %s2814_s4, 4096 }
 0x593   : > { %p2435_p1 = scmp.ne.s32.totalorder %s2766_s5, %s2434_s9  ;;  %p2439_p10 = scmp.lt.s32.totalorder %s2766_s5, %s2814_s4 }
 0x594   : > { %p2440_p12 = scmp.lt.s32.totalorder %s2438_s25, %s2434_s9 }
 0x595   : > { %p2436_p8 = pnand %p2435_p1, %p2832_p6 }
 0x596   : > { %p2441_p2 = por %p2440_p12, %p2439_p10 }
 0x597   : > { %p2437_p5 = pneg %p2436_p8 }
 0x599   : > { %p2442_p4 = pnand %p2441_p2, %p2437_p5 }
 0x59b   : > { %2445 = shalt.err (!%p2442_p4)
}
 0x59c   : > { %s2503_s23 = smov 64   ;;  %s2504_s10 = smov 4  }
 0x59d   : > { %2189 = dma.vmem_to_hbm [thread:$0]  (%p2832_p6), %s2761_s8, 1024, %s2766_s5, %s1575_s29, %s2503_s23, %s2503_s23, %s2504_s10  }
 0x59e PF: > { %p2216_p11 = scmp.ge.s32.totalorder %s2492_s18, 2  ;;  %s1603_s11 = sand.u32 1, %s2480_s15  }
 0x59f   : > { %p2833_p13 = scmp.ne.s32.totalorder %s2820_s22, 0  ;;  %s1604_s12 = scalar_lea.sflag [#allocation4], %s1603_s11 }
 0x5a1   : > { %p2206_p3 = pnand %p2216_p11, %p2833_p13 }
 0x5a3   : > { %p2207_p0 = pneg %p2206_p3 }
 0x5a5   : > { %2475 = dma.done.wait (%p2207_p0), %s1604_s12, 1024  }
 0x5a6   : > { %2477 = vsyncadd (%p2207_p0), %s1604_s12, 4294966272  ;;  %p19_p7 = scmp.ge.s32.totalorder %s2609_s24, 6   ;;  %s2834_s15 = smov %s2484_s16 }
 0x5a7   : > { %s2835_s16 = smov %s2488_s17  ;;  %s2836_s17 = smov %s2619_s27 }
 0x5a8   : > { %s2837_s18 = smov %s2609_s24  ;;  %21 = sbr.rel (!%p19_p7) target bundleno = 7 (0x7), region = 97 }
 0x5ad   :  { %1609 = vsyncpa [#allocation3], 1 }
 0x5ae   :  { %1611 = vsyncpa [#allocation3 + $0x1], 1 }
 0x5af   :  { %1612 = vsyncpa [#allocation6], 1 }
 0x5b0   :  { %1613 = vsyncpa [#allocation9], 1 }
 0x5b1   :  { %1614 = vsyncpa [#allocation4], 1 }
 0x5b2   :  { %1616 = vsyncpa [#allocation4 + $0x1], 1 }

</bundles_post_ra>
